<compile_context>
chip_gen: v5e
topology: v5e:2x2
jax: 0.10.0
libtpu: 0.0.40
codegen_flags: <defaults>
</compile_context>

<pallas_src>
import functools

import jax
import jax.numpy as jnp
import numpy as np
from jax.experimental import pallas as pl
from jax.experimental.pallas import tpu as pltpu


# ---------------- Kernel 1: streaming read of x, packed x-only moments ----------------
def _x_moments_kernel(x_ref, stat_ref, *, compute_dtype):
    x = x_ref[...].astype(compute_dtype)                      # (Cin, t_hw)
    # Gram = sum over spatial of x x^T  (contract the lane axis on the MXU, f32 acc)
    gram = jax.lax.dot_general(
        x, x, (((1,), (1,)), ((), ())),
        preferred_element_type=jnp.float32)                   # (Cin, Cin)
    s = jnp.sum(x.astype(jnp.float32), axis=1, keepdims=True)  # (Cin, 1)
    stat_ref[...] = jnp.concatenate([gram, s], axis=1)        # (Cin, Cin+1) packed


# -------------- Kernel 2: fused conv (BN folded into weight) + shift + SiLU ------------
def _conv_bn_silu_kernel(x_ref, ws_ref, shift_ref, o_ref, *, compute_dtype):
    x = x_ref[...].astype(compute_dtype)                      # (Cin, t_hw)
    # ws = scale ⊙ W  (BN scale folded into the weight rows)
    z = jnp.dot(ws_ref[...], x, preferred_element_type=jnp.float32)  # (Cout, t_hw)
    z = z + shift_ref[...]                                    # (Cout,1) lane-broadcast
    o_ref[...] = (z * jax.nn.sigmoid(z)).astype(o_ref.dtype)  # SiLU (sigmoid -> EUP)


def _pick_spatial_tile(hw, cin, cout, itemsize, tile_budget_bytes):
    """Largest multiple of 128 dividing hw whose double-buffered footprint fits."""
    per_lane_bytes = 2 * (cin + cout) * itemsize   # 2-deep pipeline: x-in + y-out
    cap = max(128, int(tile_budget_bytes // per_lane_bytes))
    cap -= cap % 128
    if hw <= cap:
        return hw
    if hw % 128 == 0:
        t = cap
        while t >= 128:
            if hw % t == 0:
                return t
            t -= 128
    # TODO(synk): hw not a multiple of 128 and larger than the budget -> full extent
    # (correct but masked lane stores); pad HW to a multiple of 128 upstream instead.
    return hw


def conv_bn_silu(x_nchw, w_oihw, gamma, beta, eps=1e-5,
                 compute_dtype=jnp.float32, out_dtype=None,
                 tile_vmem_budget_bytes=32 * 1024 * 1024,
                 vmem_limit_bytes=48 * 1024 * 1024):
    """Forward pass of ConvBnSiLU (kernel_size=1, stride=1), training-mode BN."""
    N, Cin, H, W = x_nchw.shape
    Cout, Cin_w, kh, kw = w_oihw.shape
    assert (kh, kw) == (1, 1) and Cin_w == Cin, "only kernel_size=1, stride=1 implemented"
    HW = H * W
    M = N * HW

    out_dtype = x_nchw.dtype if out_dtype is None else out_dtype
    in_itemsize = np.dtype(x_nchw.dtype).itemsize
    out_itemsize = np.dtype(out_dtype).itemsize

    t_hw = _pick_spatial_tile(HW, Cin, Cout, max(in_itemsize, out_itemsize),
                              tile_vmem_budget_bytes)
    nblk = HW // t_hw
    # Keep >= 2 grid iterations so v7x's second TensorCore isn't idled.
    if N * nblk < 2 and HW % 256 == 0:
        t_hw = HW // 2
        nblk = 2

    # glue (free reshapes, no transposes, NO dtype cast of x in the wrapper)
    x3 = x_nchw.reshape(N, Cin, HW)
    w2d = w_oihw.reshape(Cout, Cin).astype(jnp.float32)

    cparams = pltpu.CompilerParams(
        dimension_semantics=("parallel", "parallel"),
        vmem_limit_bytes=vmem_limit_bytes,
    )

    # ---- pass 1: per-block packed x moments (y never materialized / written) ----
    stats = pl.pallas_call(
        functools.partial(_x_moments_kernel, compute_dtype=compute_dtype),
        out_shape=jax.ShapeDtypeStruct((N, nblk, Cin, Cin + 1), jnp.float32),
        grid=(N, nblk),
        in_specs=[pl.BlockSpec((None, Cin, t_hw), lambda n, j: (n, 0, j))],
        out_specs=pl.BlockSpec((None, None, Cin, Cin + 1), lambda n, j: (n, j, 0, 0)),
        compiler_params=cparams,
        cost_estimate=pl.CostEstimate(
            flops=int(2 * Cin * Cin * M + Cin * M),
            transcendentals=0,
            bytes_accessed=int(M * Cin * in_itemsize
                               + N * nblk * Cin * (Cin + 1) * 4)),
    )(x3)

    # ---- glue: finalize batch statistics from x moments (tiny, stays in XLA) ----
    stats_sum = jnp.sum(stats, axis=(0, 1))                 # (Cin, Cin+1)
    exx = stats_sum[:, :Cin] / M                            # E[x x^T]   (Cin, Cin)
    mean_x = stats_sum[:, Cin] / M                          # E[x]       (Cin,)
    mean_y = w2d @ mean_x                                   # (Cout,)
    eyy = jnp.einsum('ci,ij,cj->c', w2d, exx, w2d)          # diag(W E[xx^T] W^T)
    var = jnp.maximum(eyy - mean_y * mean_y, 0.0)           # biased var (PyTorch BN)
    scale = gamma.astype(jnp.float32) / jnp.sqrt(var + eps)
    shift = beta.astype(jnp.float32) - mean_y * scale

    ws = (scale[:, None] * w2d).astype(compute_dtype)       # fold BN scale into W
    shift2 = shift.reshape(Cout, 1)                         # (Cout, 1), f32

    # ---- pass 2: fused matmul (scaled weight) + shift + SiLU, lane-dense output ----
    out3 = pl.pallas_call(
        functools.partial(_conv_bn_silu_kernel, compute_dtype=compute_dtype),
        out_shape=jax.ShapeDtypeStruct((N, Cout, HW), out_dtype),
        grid=(N, nblk),
        in_specs=[
            pl.BlockSpec((None, Cin, t_hw), lambda n, j: (n, 0, j)),
            pl.BlockSpec((Cout, Cin), lambda n, j: (0, 0)),
            pl.BlockSpec((Cout, 1), lambda n, j: (0, 0)),
        ],
        out_specs=pl.BlockSpec((None, Cout, t_hw), lambda n, j: (n, 0, j)),
        compiler_params=cparams,
        cost_estimate=pl.CostEstimate(
            flops=int(2 * Cout * Cin * M + 3 * Cout * M),
            transcendentals=int(Cout * M),
            bytes_accessed=int(M * Cin * in_itemsize + M * Cout * out_itemsize
                               + Cout * (Cin + 1) * 4)),
    )(x3, ws, shift2)

    # glue: (N, Cout, HW) -> NCHW (free reshape, no transpose)
    return out3.reshape(N, Cout, H, W)


def reference(x_nchw, w_oihw, gamma, beta, eps=1e-5):
    y = jax.lax.conv_general_dilated(
        x_nchw, w_oihw, window_strides=(1, 1), padding="VALID",
        dimension_numbers=("NCHW", "OIHW", "NCHW"))
    mean = y.mean(axis=(0, 2, 3), keepdims=True)
    var = y.var(axis=(0, 2, 3), keepdims=True)   # biased, like PyTorch training-mode BN
    z = (y - mean) / jnp.sqrt(var + eps)
    z = z * gamma.reshape(1, -1, 1, 1) + beta.reshape(1, -1, 1, 1)
    return z * jax.nn.sigmoid(z)


if __name__ == "__main__":
    key = jax.random.PRNGKey(0)
    kx, kw, kg, kb = jax.random.split(key, 4)

    N, Cin, H, W = 2, 4, 16, 16
    Cout = 8

    x = jax.random.normal(kx, (N, Cin, H, W), dtype=jnp.float32)
    w = 0.1 * jax.random.normal(kw, (Cout, Cin, 1, 1), dtype=jnp.float32)
    gamma = 1.0 + 0.1 * jax.random.normal(kg, (Cout,), dtype=jnp.float32)
    beta = 0.1 * jax.random.normal(kb, (Cout,), dtype=jnp.float32)

    out = conv_bn_silu(x, w, gamma, beta)
    out = jax.block_until_ready(out)

    ref = jax.block_until_ready(reference(x, w, gamma, beta))
    assert out.shape == (N, Cout, H, W)
    assert np.allclose(np.asarray(out), np.asarray(ref), atol=1e-4, rtol=1e-4)

    print("KERNEL_OK")
</pallas_src>

<mosaic_0001>
module attributes {stable_mosaic.version = 11 : i64} {
  func.func @_x_moments_kernel(%arg0: i32, %arg1: i32, %arg2: memref<1x4x256xf32, #tpu.memory_space<vmem>>, %arg3: memref<1x1x4x5xf32, #tpu.memory_space<vmem>>) attributes {dimension_semantics = [#tpu.dimension_semantics<parallel>, #tpu.dimension_semantics<parallel>], iteration_bounds = array<i64: 2, 1>, scalar_prefetch = 0 : i64, scratch_operands = 0 : i64, tpu.core_type = #tpu.core_type<tc>, window_params = [{transform_indices = @transform_0, window_bounds = array<i64: 1, 4, 256>}, {transform_indices = @transform_1, window_bounds = array<i64: 1, 1, 4, 5>}]} {
    %c0 = arith.constant 0 : index
    %c0_0 = arith.constant 0 : index
    %c0_1 = arith.constant 0 : index
    %0 = vector.load %arg2[%c0, %c0_0, %c0_1] : memref<1x4x256xf32, #tpu.memory_space<vmem>>, vector<1x4x256xf32>
    %1 = vector.shape_cast %0 : vector<1x4x256xf32> to vector<4x256xf32>
    %cst = arith.constant dense<0.000000e+00> : vector<4x4xf32>
    %2 = tpu.matmul %1, %1, %cst {dimension_numbers = #tpu.dot_dimension_numbers<[1], [1], [0], [0], [0, 0, 1, 0], [], []>} : vector<4x256xf32>, vector<4x256xf32>, vector<4x4xf32> -> vector<4x4xf32>
    %cst_2 = arith.constant dense<0.000000e+00> : vector<4xf32>
    %3 = vector.multi_reduction <add>, %1, %cst_2 [1] : vector<4x256xf32> to vector<4xf32>
    %4 = vector.shape_cast %3 : vector<4xf32> to vector<4x1xf32>
    %5 = tpu.concatenate %2, %4 in 1 : vector<4x4xf32>, vector<4x1xf32> -> vector<4x5xf32>
    %c0_3 = arith.constant 0 : index
    %c0_4 = arith.constant 0 : index
    %c0_5 = arith.constant 0 : index
    %c0_6 = arith.constant 0 : index
    %6 = vector.load %arg3[%c0_3, %c0_4, %c0_5, %c0_6] : memref<1x1x4x5xf32, #tpu.memory_space<vmem>>, vector<1x1x4x5xf32>
    %7 = vector.shape_cast %6 : vector<1x1x4x5xf32> to vector<4x5xf32>
    %8 = vector.shape_cast %5 : vector<4x5xf32> to vector<1x1x4x5xf32>
    tpu.vector_store %arg3[%c0_3, %c0_4, %c0_5, %c0_6], %8 {strides = array<i32>} : memref<1x1x4x5xf32, #tpu.memory_space<vmem>>, vector<1x1x4x5xf32>,
    return
  }
  func.func @transform_0(%arg0: i32, %arg1: i32) -> (i32, i32, i32) {
    %c0_i32 = arith.constant 0 : i32
    %c0_i32_0 = arith.constant 0 : i32
    return %arg0, %c0_i32, %arg1 : i32, i32, i32
  }
  func.func @transform_1(%arg0: i32, %arg1: i32) -> (i32, i32, i32, i32) {
    %c0_i32 = arith.constant 0 : i32
    %c0_i32_0 = arith.constant 0 : i32
    %c0_i32_1 = arith.constant 0 : i32
    return %arg0, %arg1, %c0_i32, %c0_i32_0 : i32, i32, i32, i32
  }
}

</mosaic_0001>

<bundles_post_ra>
// kernel: tpu_custom_call.1
= control target key start
LH: loop header
LB: loop body
LE: loop exit
PB: predicated region body
PF: predicated region fallthrough
CT: control target
= control target key end

     0   :  { %6 = vsyncpa [#allocation3], 0  ;;  %s642_s0 = inlined_call_operand.hbm [shape: f32[2,4,256], index: 0, kind: input, shape index: {}]   ;;  %s643_s1 = inlined_call_operand.hbm [shape: f32[2,1,4,5], index: 1, kind: output, shape index: {}]  }
   0x1   :  { %8 = vsyncpa [#allocation3 + $0x1], 0 }
   0x2   :  { %9 = vsyncpa [#allocation4], 0 }
   0x3   :  { %11 = vsyncpa [#allocation4 + $0x1], 0  ;;  %s521_s6 = smov 0   ;;  %s523_s7 = smov 0  }
   0x4   :  { %s525_s8 = smov 0   ;;  %s527_s9 = smov 0  }
   0x5   :  { %s529_s10 = smov 0   ;;  %s531_s11 = smov 0  }
   0x6 LB: > { %s320_s12 = sadd.s32 4294967295, %s509_s11   ;;  %s321_s13 = sadd.s32 4294967294, %s509_s11   ;;  %s509_s11 = sphi %s531_s11, %s17_s11   ;;  %s505_s10 = sphi %s529_s10, %s652_s10   ;;  %s501_s9 = sphi %s527_s9, %s651_s9   ;;  %s497_s8 = sphi %s525_s8, %s650_s8   ;;  %s493_s7 = sphi %s523_s7, %s649_s7   ;;  %s489_s6 = sphi %s521_s6, %s648_s6  }
   0x7   : > { %s29_s14 = sadd.s32 1, %s505_s10  ;;  %s38_s15 = sadd.s32 1, %s497_s8 }
   0x8   : > { %p31_p0 = scmp.ge.s32.totalorder %s29_s14, 2  ;;  %p45_p1 = scmp.ne.s32.totalorder %s497_s8, %s493_s7 }
   0x9   : > { %p46_p2 = scmp.eq.s32.totalorder %s509_s11, 0  ;;  %p51_p3 = scmp.ne.s32.totalorder %s493_s7, %s489_s6 }
   0xa   : > { %s654_s14 = smov (%p31_p0, %s29_s14), 0  ;;  %p52_p5 = scmp.eq.s32.totalorder %s320_s12, 0 }
   0xb   : > { %p562_p4 = por %p46_p2, %p45_p1  ;;  %s33_s17 = ssub.s32 %s505_s10, %s654_s14 }
   0xc   : > { %p77_p6 = scmp.eq.s32.totalorder %s320_s12, 1  ;;  %p36_p7 = scmp.eq.s32.totalorder %s33_s17, 0 }
   0xd   : > { %p568_p8 = por %p52_p5, %p51_p3  ;;  %p83_p10 = scmp.eq.s32.totalorder %s321_s13, 1 }
   0xe   : > { %p572_p9 = por %p77_p6, %p45_p1  ;;  %p323_p12 = scmp.ge.s32.totalorder %s509_s11, 2 }
   0xf   : > { %s577_s20 = scalar_select %p36_p7, %s497_s8, %s38_s15  }
  0x10   : > { %p579_p11 = por %p83_p10, %p51_p3  ;;  %p347_p13 = scmp.lt.s32.totalorder %s509_s11, 2 }
  0x11   : > { %s103_s22 = sand.u32 1, %s497_s8   ;;  %s334_s24 = sshll.u32 %s505_s10, 3 }
  0x12   : > { %s324_s23 = sshll.u32 %s103_s22, 3  ;;  %s114_s27 = scalar_lea.hbm %s642_s0, %s334_s24 }
  0x13   : > { %s107_s28 = scalar_lea.vmem [#allocation2], %s324_s23  ;;  %s116_s30 = sshll.u32 %s114_s27, 4  ;;  %s117_s30 = int_to_ptr.hbm [resolvable:$true] %s116_s30 }
  0x14   : > { %s118_s29 = sshll.u32 %s107_s28, 4  ;;  %p340_p0 = pnand %p347_p13, %p562_p4  ;;  %s119_s29 = int_to_ptr.vmem [resolvable:$true] %s118_s29 }
  0x15   : > { %p327_p1 = scmp.ge.s32.totalorder %s509_s11, 1  ;;  %p123_p2 = scmp.lt.s32.totalorder %s509_s11, 3 }
  0x16   : > { %s104_s2 = scalar_lea.sflag [#allocation3], %s103_s22 }
  0x17   : > { %342 = dma.hbm_to_vmem [thread:$0]  (!%p340_p0), %s117_s30, 128, %s119_s29, %s104_s2  }
  0x18   : > { %p124_p3 = pnand %p327_p1, %p123_p2 }
  0x19   : > { %s595_s3 = sand.u32 (!%p124_p3), 1, %s493_s7  }
  0x1a   : > { %127 = sbr.rel (%p124_p3) target bundleno = 184 (0xb8), region = 24  ;;  %s328_s4 = sshll.u32 (!%p124_p3), %s595_s3, 3 }
  0x1b   : > { %s130_s5 = scalar_lea.sflag (!%p124_p3), [#allocation3], %s595_s3  ;;  %s133_s12 = scalar_lea.vmem (!%p124_p3), [#allocation2], %s328_s4 }
  0x1f   : > { %480 = dma.done.wait (%p568_p8), %s130_s5, 128  }
  0x20   : > { %482 = vsyncadd (%p568_p8), %s130_s5, 4294967168  ;;  %v154_v0 = vld [vmem:[%s133_s12] sm:$0xff]  ;;  %vm211_vm0 = vcmask 1043456   ;;  %s329_s13 = sshll.u32 %s595_s3, 2  ;;  %s331_s15 = sshll.u32 %s501_s9, 2  ;;  %vm217_vm1 = vcmask 31744  }
  0x21   : > { %156 = vst [vmem:[#allocation1] ss:$2 sm:$0xff] %v154_v0  ;;  %s233_s18 = scalar_lea.hbm %s643_s1, %s331_s15  ;;  %s152_s22 = scalar_lea.vmem [#allocation5], %s329_s13  ;;  %vm219_vm2 = vcmask 35840  }
  0x22   : > { %s235_s23 = sshll.u32 %s152_s22, 4  ;;  %s237_s24 = sshll.u32 %s233_s18, 4  ;;  %s236_s23 = int_to_ptr.vmem [resolvable:$true] %s235_s23  ;;  %s238_s24 = int_to_ptr.hbm [resolvable:$true] %s237_s24 }
  0x23   : > { %s222_s25 = scalar_lea.sflag [#allocation4], %s595_s3  ;;  %s441_s9 = sshra.s32 %s238_s24, 4  ;;  %s442_s9 = int_to_ptr.hbm [resolvable:$true] %s441_s9 }
  0x24   : > { %s443_s26 = scalar_lea.hbm %s442_s9, 4  ;;  %s447_s29 = scalar_lea.hbm %s643_s1, 8 }
  0x25   : > { %p444_p4 = scmp.ne.s32.totalorder %s442_s9, %s443_s26  ;;  %p448_p7 = scmp.lt.s32.totalorder %s442_s9, %s643_s1 }
  0x26   : > { %p449_p8 = scmp.lt.s32.totalorder %s447_s29, %s443_s26 }
  0x27   : > { %p445_p5 = pnand %p444_p4, %p572_p9 }
  0x28   : > { %v157_v1 = vld.sshfl [vmem:[#allocation1] sm:$0xff pattern:$0x75316420]  ;;  %v158_v2 = vld.sshfl [vmem:[#allocation1 + $0x8] sm:$0xff pattern:$0x75316420]  ;;  %p450_p10 = por %p449_p8, %p448_p7 }
  0x29   : > { %161 = vst [vmem:[#allocation1] ss:$2 sm:$0xff] %v154_v0  ;;  %p446_p6 = pneg %p445_p5 }
  0x2b   : > { %p451_p13 = pnand %p450_p10, %p446_p6 }
  0x30   : > { %v162_v3 = vld.sshfl [vmem:[#allocation1] sm:$0xff pattern:$0x75316420]  ;;  %v163_v4 = vld.sshfl [vmem:[#allocation1 + $0x8] sm:$0xff pattern:$0x75316420] }
  0x31   : > { %181 = vmatpush.xpose.msra.mxu0 %v162_v3  ;;  %201 = vmatpush.xpose.msra.mxu1 %v163_v4  ;;  %206 = vst [vmem:[#allocation1] ss:$2 sm:$0xff] %v154_v0 }
  0x34   : > { %182 = vmatmul.f32.vlgmr.msra.gmra.mxu0 %v157_v1  ;;  %202 = vmatmul.f32.vlgmr.msra.gmra.mxu1 %v158_v2 }
  0x38   : > { %v207_v5 = vld.sshfl [vmem:[#allocation1] sm:$0xff pattern:$0x75316420]  ;;  %v208_v6 = vld.sshfl [vmem:[#allocation1 + $0x8] sm:$0xff pattern:$0x75316420] }
  0x39   : > { %v212_v7 = vsel %vm211_vm0, %v207_v5, 0.0  ;;  %v213_v8 = vsel %vm211_vm0, %v208_v6, 0.0 }
  0x3a   : > { %v214_v9 = vadd.f32 %v213_v8, %v212_v7 }
  0x3c   : > { %215 = vadd.xlane.f32.xlu0 %v214_v9 }
  0xaf   : > { %v216_v10 = vpop.xlane.xlu0 %215 }
  0xb1   : > { %v183_v11 = vpop.f32.mrf.mxu0  ;;  %v203_v12 = vpop.f32.mrf.mxu1 }
  0xb2   : > { %v204_v13 = vadd.f32 %v203_v12, %v183_v11 }
  0xb4   : > { %v218_v14 = vsel %vm217_vm1, %v204_v13, %v216_v10 }
  0xb5   : > { %220 = vst.msk [vmem:[%s152_s22] sm:$0xf] %vm219_vm2, %v218_v14 }
  0xb6   : > { %454 = shalt.err (!%p451_p13)
}
  0xb7   : > { %337 = dma.vmem_to_hbm [thread:$0]  (%p572_p9), %s236_s23, 64, %s238_s24, %s222_s25  }
  0xb8 PF: > { %s249_s3 = sand.u32 1, %s489_s6   ;;  %p344_p0 = pnand %p323_p12, %p579_p11 }
  0xb9   : > { %s250_s4 = scalar_lea.sflag [#allocation4], %s249_s3 }
  0xba   : > { %p345_p1 = pneg %p344_p0 }
  0xbc   : > { %484 = dma.done.wait (%p345_p1), %s250_s4, 64  }
  0xbd   : > { %486 = vsyncadd (%p345_p1), %s250_s4, 4294967232  ;;  %s17_s11 = sadd.s32 1, %s509_s11   ;;  %s648_s6 = smov %s493_s7 }
  0xbe   : > { %p14_p2 = scmp.ge.s32.totalorder %s17_s11, 4   ;;  %s649_s7 = smov %s497_s8 }
  0xbf   : > { %s650_s8 = smov %s577_s20  ;;  %s651_s9 = smov %s505_s10 }
  0xc0   : > { %s652_s10 = smov %s654_s14  ;;  %16 = sbr.rel (!%p14_p2) target bundleno = 6 (0x6), region = 69 }
  0xc5   :  { %256 = vsyncpa [#allocation3], 1 }
  0xc6   :  { %258 = vsyncpa [#allocation3 + $0x1], 1 }
  0xc7   :  { %259 = vsyncpa [#allocation4], 1 }
  0xc8   :  { %261 = vsyncpa [#allocation4 + $0x1], 1 }

</bundles_post_ra>
